<compile_context>
chip_gen: v7x
topology: tpu7x:2x2x1
jax: 0.10.0
libtpu: 0.0.40
codegen_flags: <defaults>
</compile_context>

<pallas_src>
import math

import jax
import jax.numpy as jnp
from jax.experimental import pallas as pl
from jax.experimental.pallas import tpu as pltpu

_INV_SQRT2 = 1.0 / math.sqrt(2.0)


def _mlp_kernel(x_ref, wfc_ref, bfc_ref, wprojt_ref, bproj_ref, o_ref, acc_ref):
    # Per grid step (i, k):
    #   x_ref:      (TM, D)   bf16  token tile (resident across k)
    #   wfc_ref:    (TH, D)   bf16  c_fc weight row-block (PyTorch (out, in))
    #   bfc_ref:    (1, TH)   f32   c_fc bias slice
    #   wprojt_ref: (TH, D)   bf16  c_proj weight, pre-transposed to (H, D)
    #   bproj_ref:  (1, D)    f32   c_proj bias
    #   o_ref:      (TM, D)         output tile (written only at last hidden tile)
    #   acc_ref:    (TM, D)   f32   accumulator over hidden tiles
    k = pl.program_id(1)

    @pl.when(k == 0)
    def _():
        # Fold bproj into the accumulator init (saves a full (TM, D) VPU pass
        # plus a broadcast in the epilogue).
        acc_ref[...] = jnp.broadcast_to(bproj_ref[...], acc_ref.shape)

    # h_k = x @ Wfc[k-slice, :]^T  -- NT form, contract last dims of both.
    h = jax.lax.dot_general(
        x_ref[...], wfc_ref[...], (((1,), (1,)), ((), ())),
        preferred_element_type=jnp.float32)
    h = h + bfc_ref[...]
    # Exact (erf) GELU in f32 -- matches torch.nn.GELU(approximate='none').
    # TODO(synk): tanh-approx GELU would move this work to the EUP slot but
    #             changes numerics vs the PyTorch module; needs owner sign-off.
    h = 0.5 * h * (1.0 + jax.lax.erf(h * _INV_SQRT2))
    # acc += h_k @ WprojT[k-slice, :]  -- NN form, contiguous RHS row-block.
    acc_ref[...] += jax.lax.dot_general(
        h.astype(wprojt_ref.dtype), wprojt_ref[...], (((1,), (0,)), ((), ())),
        preferred_element_type=jnp.float32)

    @pl.when(k == pl.num_programs(1) - 1)
    def _():
        # dropout p = 0.0 -> identity.
        # TODO(synk): training-mode dropout (p > 0) would need pltpu.prng_seed +
        #             pltpu.prng_random_bits masking here.
        o_ref[...] = acc_ref[...].astype(o_ref.dtype)


def _round_up(n, m):
    return ((n + m - 1) // m) * m


def _pick_hidden_tile(total, preferred, align=128):
    """Largest divisor of `total` <= preferred that is a multiple of `align`.
    `total` is guaranteed to be a multiple of `align` by the H-padding guard,
    so this always terminates with a valid tile."""
    if total <= preferred:
        return total
    t = (preferred // align) * align
    while t >= align:
        if total % t == 0:
            return t
        t -= align
    return total


def _tile_config():
    """Generation-aware (tile_m_pref, tile_h_pref, vmem_limit_bytes)."""
    kind = ""
    try:
        kind = jax.devices()[0].device_kind.lower()
    except Exception:
        pass
    if "v6" in kind:
        # v6e: worst FLOPs:BW ratio -> biggest token tile, raise VMEM limit.
        return 1024, 512, 112 * 1024 * 1024
    if "v5" in kind:
        # v5e/v5p: roughly balanced at 256 -> 512 gives 2x weight-reuse headroom.
        return 512, 512, 100 * 1024 * 1024
    if "7" in kind:
        # v7x: 64 MiB VMEM/TC -> shrink tile_h to afford tile_m=512, keep headroom.
        return 512, 256, 56 * 1024 * 1024
    # Unknown generation: conservative defaults.
    return 512, 256, 64 * 1024 * 1024


def prepare_params(w_fc, b_fc, w_proj, b_proj):
    """One-time parameter prep OUTSIDE the hot path: bf16 weights, c_proj
    weight pre-transposed from PyTorch (D, H) to (H, D) so each per-k slice is
    a contiguous row-block DMA and the second matmul is transpose-free."""
    return (jnp.asarray(w_fc, jnp.bfloat16),          # (H, D)
            jnp.asarray(b_fc, jnp.float32),           # (H,)
            jnp.asarray(w_proj, jnp.bfloat16).T,      # (H, D)  == c_proj.weight.T
            jnp.asarray(b_proj, jnp.float32))         # (D,)


@jax.jit
def mlp_pallas(x, w_fc, b_fc, w_proj_t, b_proj):
    """x: (B, T, D).
    w_fc:     (H, D)  c_fc.weight  (PyTorch (out, in) layout), ideally bf16.
    b_fc:     (H,)
    w_proj_t: (H, D)  c_proj.weight pre-transposed (see prepare_params), bf16.
    b_proj:   (D,)
    """
    B, T, D = x.shape
    H = w_fc.shape[0]
    M = B * T

    tile_m_pref, tile_h_pref, vmem_limit = _tile_config()

    # bf16 MXU weights. These astypes are no-ops when params came from
    # prepare_params (the intended path); biases stay f32.
    w_fc = w_fc.astype(jnp.bfloat16)
    w_proj_t = w_proj_t.astype(jnp.bfloat16)
    b_fc = b_fc.astype(jnp.float32)
    bproj2 = b_proj.astype(jnp.float32).reshape(1, D)

    # Guard: pad H to a multiple of 128 so a 128-aligned hidden tile always
    # exists (padded hidden units: GELU(0 + 0) = 0, times zero rows -> exact 0).
    h_pad = _round_up(H, 128)
    if h_pad != H:
        w_fc = jnp.pad(w_fc, ((0, h_pad - H), (0, 0)))
        w_proj_t = jnp.pad(w_proj_t, ((0, h_pad - H), (0, 0)))
        b_fc = jnp.pad(b_fc, (0, h_pad - H))
    bfc2 = b_fc.reshape(1, h_pad)

    tile_h = _pick_hidden_tile(h_pad, tile_h_pref)
    num_h = h_pad // tile_h

    # Token tile: as large as the generation budget allows (weight HBM traffic
    # scales with num_m, never with tile_h), MXU/sublane aligned.
    tile_m = min(tile_m_pref, _round_up(M, 8))
    # Megacore: keep >= 2 row tiles when halving still leaves >=256-row tiles.
    if pl.cdiv(M, tile_m) < 2 and M >= 512:
        tile_m = _round_up(pl.cdiv(M, 2), 256)
    num_m = pl.cdiv(M, tile_m)
    m_pad = num_m * tile_m

    # bf16 activations end-to-end in the kernel: halves x VMEM/HBM traffic and
    # removes the per-hidden-step recast of the resident x tile.
    x2 = x.reshape(M, D).astype(jnp.bfloat16)
    if m_pad != M:
        x2 = jnp.pad(x2, ((0, m_pad - M), (0, 0)))

    out_dtype = x.dtype

    # Decode-like shapes (single token tile): deepen the weight pipeline so the
    # per-step overhead / DMA issue latency don't expose the weight stream.
    use_deep_pipeline = (num_m == 1 and num_h >= 3)

    def wspec(shape, index_map):
        if use_deep_pipeline:
            return pl.BlockSpec(shape, index_map, pipeline_mode=pl.Buffered(3))
        return pl.BlockSpec(shape, index_map)

    # Advisory cost: weights are re-streamed once per token tile.
    bytes_accessed = (
        M * D * 2                                      # read x (bf16)
        + num_m * (w_fc.size + w_proj_t.size) * 2      # bf16 weights, re-streamed
        + bfc2.size * 4 + bproj2.size * 4              # f32 biases
        + M * D * jnp.dtype(out_dtype).itemsize)       # write y
    cost = pl.CostEstimate(flops=4 * M * D * h_pad, transcendentals=M * h_pad,
                           bytes_accessed=bytes_accessed)

    out2 = pl.pallas_call(
        _mlp_kernel,
        out_shape=jax.ShapeDtypeStruct((m_pad, D), out_dtype),
        grid_spec=pltpu.PrefetchScalarGridSpec(
            num_scalar_prefetch=0,
            grid=(num_m, num_h),
            in_specs=[
                pl.BlockSpec((tile_m, D), lambda i, k: (i, 0)),    # x row tile
                wspec((tile_h, D), lambda i, k: (k, 0)),           # Wfc row-block
                pl.BlockSpec((1, tile_h), lambda i, k: (0, k)),    # bfc slice
                wspec((tile_h, D), lambda i, k: (k, 0)),           # WprojT row-block
                pl.BlockSpec((1, D), lambda i, k: (0, 0)),         # bproj
            ],
            out_specs=pl.BlockSpec((tile_m, D), lambda i, k: (i, 0)),
            scratch_shapes=[pltpu.VMEM((tile_m, D), jnp.float32)],
        ),
        compiler_params=pltpu.CompilerParams(
            dimension_semantics=("parallel", "arbitrary"),
            vmem_limit_bytes=vmem_limit),
        cost_estimate=cost,
    )(x2, w_fc, bfc2, w_proj_t, bproj2)

    return out2[:M].reshape(B, T, D)


def _reference_mlp(x, w_fc, b_fc, w_proj, b_proj):
    # Precision-matched reference: bf16 MXU inputs, f32 accumulation, f32 GELU.
    xb = x.astype(jnp.bfloat16)
    h = jnp.dot(xb, w_fc.astype(jnp.bfloat16).T,
                preferred_element_type=jnp.float32) + b_fc
    h = 0.5 * h * (1.0 + jax.lax.erf(h * _INV_SQRT2))
    y = jnp.dot(h.astype(jnp.bfloat16), w_proj.astype(jnp.bfloat16).T,
                preferred_element_type=jnp.float32) + b_proj
    return y.astype(x.dtype)  # dropout p=0 -> identity


if __name__ == "__main__":
    # Config: n_embd=32, bias=True, dropout=0.0  ->  hidden = 4 * 32 = 128
    B, T, D = 2, 8, 32
    H = 4 * D

    key = jax.random.PRNGKey(0)
    kx, k1, k2, k3, k4 = jax.random.split(key, 5)

    x = jax.random.normal(kx, (B, T, D), dtype=jnp.float32)
    # "PyTorch-shaped" parameters (out_features, in_features)
    w_fc = jax.random.normal(k1, (H, D), dtype=jnp.float32) * (1.0 / math.sqrt(D))
    b_fc = jax.random.normal(k2, (H,), dtype=jnp.float32) * 0.01
    w_proj = jax.random.normal(k3, (D, H), dtype=jnp.float32) * (1.0 / math.sqrt(H))
    b_proj = jax.random.normal(k4, (D,), dtype=jnp.float32) * 0.01

    # One-time param prep (bf16 cast + c_proj transpose) outside the hot path.
    w_fc_p, b_fc_p, w_proj_t_p, b_proj_p = prepare_params(w_fc, b_fc, w_proj, b_proj)

    out = mlp_pallas(x, w_fc_p, b_fc_p, w_proj_t_p, b_proj_p)
    out = jax.block_until_ready(out)

    ref = _reference_mlp(x, w_fc_p, b_fc, w_proj.astype(jnp.bfloat16), b_proj)
    assert out.shape == (B, T, D)
    err = jnp.max(jnp.abs(out - ref))
    assert jnp.allclose(out, ref, atol=5e-3, rtol=5e-3), f"mismatch: max abs err {err:.3e}"

    print("KERNEL_OK")
</pallas_src>

<mosaic_0001>
module attributes {stable_mosaic.version = 11 : i64} {
  func.func @_mlp_kernel(%arg0: i32, %arg1: i32, %arg2: memref<16x32xbf16, #tpu.memory_space<vmem>>, %arg3: memref<128x32xbf16, #tpu.memory_space<vmem>>, %arg4: memref<1x128xf32, #tpu.memory_space<vmem>>, %arg5: memref<128x32xbf16, #tpu.memory_space<vmem>>, %arg6: memref<1x32xf32, #tpu.memory_space<vmem>>, %arg7: memref<16x32xf32, #tpu.memory_space<vmem>>, %arg8: memref<16x32xf32, #tpu.memory_space<vmem>>) attributes {dimension_semantics = [#tpu.dimension_semantics<parallel>, #tpu.dimension_semantics<arbitrary>], iteration_bounds = array<i64: 1, 1>, scalar_prefetch = 0 : i64, scratch_operands = 1 : i64, tpu.core_type = #tpu.core_type<tc>, window_params = [{transform_indices = @transform_0, window_bounds = array<i64: 16, 32>}, {transform_indices = @transform_1, window_bounds = array<i64: 128, 32>}, {transform_indices = @transform_2, window_bounds = array<i64: 1, 128>}, {transform_indices = @transform_3, window_bounds = array<i64: 128, 32>}, {pipeline_mode = #tpu.pipeline_mode<synchronous>, transform_indices = @transform_4, window_bounds = array<i64: 1, 32>}, {transform_indices = @transform_5, window_bounds = array<i64: 16, 32>}]} {
    %c0_i32 = arith.constant 0 : i32
    %0 = arith.cmpi eq, %arg1, %c0_i32 : i32
    %1 = arith.extui %0 : i1 to i32
    %c0_i32_0 = arith.constant 0 : i32
    %2 = arith.cmpi ne, %1, %c0_i32_0 : i32
    scf.if %2 {
      %c0_18 = arith.constant 0 : index
      %c0_19 = arith.constant 0 : index
      %26 = vector.load %arg6[%c0_18, %c0_19] : memref<1x32xf32, #tpu.memory_space<vmem>>, vector<1x32xf32>
      %27 = vector.shape_cast %26 : vector<1x32xf32> to vector<1x32xf32>
      %28 = vector.broadcast %27 : vector<1x32xf32> to vector<16x32xf32>
      %c0_20 = arith.constant 0 : index
      %c0_21 = arith.constant 0 : index
      %29 = vector.load %arg8[%c0_20, %c0_21] : memref<16x32xf32, #tpu.memory_space<vmem>>, vector<16x32xf32>
      tpu.vector_store %arg8[%c0_20, %c0_21], %28 {strides = array<i32>} : memref<16x32xf32, #tpu.memory_space<vmem>>, vector<16x32xf32>,
    } else {
    }
    %c0 = arith.constant 0 : index
    %c0_1 = arith.constant 0 : index
    %3 = vector.load %arg2[%c0, %c0_1] : memref<16x32xbf16, #tpu.memory_space<vmem>>, vector<16x32xbf16>
    %c0_2 = arith.constant 0 : index
    %c0_3 = arith.constant 0 : index
    %4 = vector.load %arg3[%c0_2, %c0_3] : memref<128x32xbf16, #tpu.memory_space<vmem>>, vector<128x32xbf16>
    %cst = arith.constant dense<0.000000e+00> : vector<16x128xf32>
    %5 = tpu.matmul %3, %4, %cst {dimension_numbers = #tpu.dot_dimension_numbers<[1], [1], [0], [0], [0, 0, 1, 0], [], []>} : vector<16x32xbf16>, vector<128x32xbf16>, vector<16x128xf32> -> vector<16x128xf32>
    %c0_4 = arith.constant 0 : index
    %c0_5 = arith.constant 0 : index
    %6 = vector.load %arg4[%c0_4, %c0_5] : memref<1x128xf32, #tpu.memory_space<vmem>>, vector<1x128xf32>
    %7 = vector.broadcast %6 : vector<1x128xf32> to vector<16x128xf32>
    %8 = arith.addf %5, %7 : vector<16x128xf32>
    %cst_6 = arith.constant 5.000000e-01 : f32
    %9 = vector.broadcast %cst_6 : f32 to vector<16x128xf32>
    %10 = arith.mulf %9, %8 : vector<16x128xf32>
    %cst_7 = arith.constant 0.707106769 : f32
    %11 = vector.broadcast %cst_7 : f32 to vector<16x128xf32>
    %12 = arith.mulf %8, %11 : vector<16x128xf32>
    %13 = math.erf %12 : vector<16x128xf32>
    %cst_8 = arith.constant 1.000000e+00 : f32
    %14 = vector.broadcast %cst_8 : f32 to vector<16x128xf32>
    %15 = arith.addf %14, %13 : vector<16x128xf32>
    %16 = arith.mulf %10, %15 : vector<16x128xf32>
    %c0_9 = arith.constant 0 : index
    %c0_10 = arith.constant 0 : index
    %17 = vector.load %arg8[%c0_9, %c0_10] : memref<16x32xf32, #tpu.memory_space<vmem>>, vector<16x32xf32>
    %18 = arith.truncf %16 : vector<16x128xf32> to vector<16x128xbf16>
    %c0_11 = arith.constant 0 : index
    %c0_12 = arith.constant 0 : index
    %19 = vector.load %arg5[%c0_11, %c0_12] : memref<128x32xbf16, #tpu.memory_space<vmem>>, vector<128x32xbf16>
    %cst_13 = arith.constant dense<0.000000e+00> : vector<16x32xf32>
    %20 = tpu.matmul %18, %19, %cst_13 {dimension_numbers = #tpu.dot_dimension_numbers<[1], [0], [0], [1], [0, 0, 1, 1], [], []>} : vector<16x128xbf16>, vector<128x32xbf16>, vector<16x32xf32> -> vector<16x32xf32>
    %21 = arith.addf %17, %20 : vector<16x32xf32>
    %c0_14 = arith.constant 0 : index
    %c0_15 = arith.constant 0 : index
    %22 = vector.load %arg8[%c0_14, %c0_15] : memref<16x32xf32, #tpu.memory_space<vmem>>, vector<16x32xf32>
    tpu.vector_store %arg8[%c0_14, %c0_15], %21 {strides = array<i32>} : memref<16x32xf32, #tpu.memory_space<vmem>>, vector<16x32xf32>,
    %c0_i32_16 = arith.constant 0 : i32
    %23 = arith.cmpi eq, %arg1, %c0_i32_16 : i32
    %24 = arith.extui %23 : i1 to i32
    %c0_i32_17 = arith.constant 0 : i32
    %25 = arith.cmpi ne, %24, %c0_i32_17 : i32
    scf.if %25 {
      %c0_18 = arith.constant 0 : index
      %c0_19 = arith.constant 0 : index
      %26 = vector.load %arg8[%c0_18, %c0_19] : memref<16x32xf32, #tpu.memory_space<vmem>>, vector<16x32xf32>
      %c0_20 = arith.constant 0 : index
      %c0_21 = arith.constant 0 : index
      %27 = vector.load %arg7[%c0_20, %c0_21] : memref<16x32xf32, #tpu.memory_space<vmem>>, vector<16x32xf32>
      tpu.vector_store %arg7[%c0_20, %c0_21], %26 {strides = array<i32>} : memref<16x32xf32, #tpu.memory_space<vmem>>, vector<16x32xf32>,
    } else {
    }
    return
  }
  func.func @transform_0(%arg0: i32, %arg1: i32) -> (i32, i32) {
    %c0_i32 = arith.constant 0 : i32
    %c0_i32_0 = arith.constant 0 : i32
    return %arg0, %c0_i32 : i32, i32
  }
  func.func @transform_1(%arg0: i32, %arg1: i32) -> (i32, i32) {
    %c0_i32 = arith.constant 0 : i32
    %c0_i32_0 = arith.constant 0 : i32
    return %arg1, %c0_i32 : i32, i32
  }
  func.func @transform_2(%arg0: i32, %arg1: i32) -> (i32, i32) {
    %c0_i32 = arith.constant 0 : i32
    %c0_i32_0 = arith.constant 0 : i32
    return %c0_i32, %arg1 : i32, i32
  }
  func.func @transform_3(%arg0: i32, %arg1: i32) -> (i32, i32) {
    %c0_i32 = arith.constant 0 : i32
    %c0_i32_0 = arith.constant 0 : i32
    return %arg1, %c0_i32 : i32, i32
  }
  func.func @transform_4(%arg0: i32, %arg1: i32) -> (i32, i32) {
    %c0_i32 = arith.constant 0 : i32
    %c0_i32_0 = arith.constant 0 : i32
    %c0_i32_1 = arith.constant 0 : i32
    return %c0_i32, %c0_i32_0 : i32, i32
  }
  func.func @transform_5(%arg0: i32, %arg1: i32) -> (i32, i32) {
    %c0_i32 = arith.constant 0 : i32
    %c0_i32_0 = arith.constant 0 : i32
    return %arg0, %c0_i32 : i32, i32
  }
}

</mosaic_0001>

<bundles_post_ra>
// kernel: mlp_pallas.1
= control target key start
LH: loop header
LB: loop body
LE: loop exit
PB: predicated region body
PF: predicated region fallthrough
CT: control target
= control target key end

     0   :  { %10 = vsyncpa [#allocation4], 0  ;;  %s783_s0 = inlined_call_operand.hbm [shape: bf16[16,32], index: 0, kind: input, shape index: {}]   ;;  %s784_s1 = inlined_call_operand.hbm [shape: bf16[128,32], index: 1, kind: input, shape index: {}]   ;;  %s785_s2 = inlined_call_operand.hbm [shape: f32[1,128], index: 2, kind: input, shape index: {}]   ;;  %s786_s3 = inlined_call_operand.hbm [shape: bf16[128,32], index: 3, kind: input, shape index: {}]   ;;  %s787_s4 = inlined_call_operand.hbm [shape: f32[1,32], index: 4, kind: input, shape index: {}]   ;;  %s788_s5 = inlined_call_operand.hbm [shape: f32[16,32], index: 5, kind: output, shape index: {}]  }
   0x1   :  { %11 = vsyncpa [#allocation7], 0 }
   0x2   :  { %12 = vsyncpa [#allocation10], 0 }
   0x3   :  { %13 = vsyncpa [#allocation5], 0  ;;  %s638_s18 = smov [#allocation6]   ;;  %s639_s20 = smov [#allocation9]  }
   0x4   :  { %s31_s19 = sshll.u32 %s638_s18, 4  ;;  %s53_s21 = sshll.u32 %s639_s20, 4  ;;  %s32_s19 = int_to_ptr.vmem [resolvable:$true] %s31_s19  ;;  %s680_s21 = int_to_ptr.vmem [resolvable:$true] %s53_s21 }
   0x5   :  { %s498_s24 = scalar_lea.hbm %s784_s1, 1024 }
   0x6   :  { %p499_p0 = scmp.ne.s32.totalorder %s784_s1, %s498_s24  ;;  %p502_p1 = scmp.lt.u32.totalorder %s498_s24, %s784_s1 }
   0x8   :  { %p504_p2 = pnand %p502_p1, %p499_p0 }
   0xa   :  { %507 = shalt.err (!%p504_p2)
}
   0xb   :  { %s508_s29 = scalar_lea.vmem %s32_s19, 1024  ;;  %p513_p4 = scmp.lt.s32.totalorder %s32_s19, %s32_s19 }
   0xc   :  { %p509_p3 = scmp.ne.s32.totalorder %s32_s19, %s508_s29  ;;  %p514_p5 = scmp.lt.s32.totalorder %s508_s29, %s508_s29 }
   0xe   :  { %p515_p6 = por %p514_p5, %p513_p4 }
  0x10   :  { %p516_p7 = pnand %p515_p6, %p509_p3 }
  0x12   :  { %519 = shalt.err (!%p516_p7)
}
  0x13   :  { %s640_s30 = smov 64   ;;  %s641_s6 = smov 4  }
  0x14   :  { %37 = dma.hbm_to_vmem [thread:$0]  %s784_s1, 1024, %s32_s19, [#allocation7], %s640_s30, %s640_s30, %s641_s6  }
  0x15   :  { %s520_s11 = scalar_lea.hbm %s786_s3, 1024 }
  0x16   :  { %p521_p8 = scmp.ne.s32.totalorder %s786_s3, %s520_s11  ;;  %p524_p9 = scmp.lt.u32.totalorder %s520_s11, %s786_s3 }
  0x18   :  { %p526_p10 = pnand %p524_p9, %p521_p8 }
  0x1a   :  { %529 = shalt.err (!%p526_p10)
}
  0x1b   :  { %s530_s16 = scalar_lea.vmem %s680_s21, 1024  ;;  %p535_p12 = scmp.lt.s32.totalorder %s680_s21, %s680_s21 }
  0x1c   :  { %p531_p11 = scmp.ne.s32.totalorder %s680_s21, %s530_s16  ;;  %p536_p13 = scmp.lt.s32.totalorder %s530_s16, %s530_s16 }
  0x1e   :  { %p537_p0 = por %p536_p13, %p535_p12 }
  0x20   :  { %p538_p1 = pnand %p537_p0, %p531_p11 }
  0x22   :  { %541 = shalt.err (!%p538_p1)
}
  0x23   :  { %59 = dma.hbm_to_vmem [thread:$0]  %s786_s3, 1024, %s680_s21, [#allocation10], %s640_s30, %s640_s30, %s641_s6  }
  0x24   :  { %s642_s18 = smov [#allocation3]   ;;  %s643_s20 = smov [#allocation8]  }
  0x25   :  { %s19_s19 = sshll.u32 %s642_s18, 4  ;;  %s44_s22 = sshll.u32 %s643_s20, 4  ;;  %s20_s19 = int_to_ptr.vmem [resolvable:$true] %s19_s19  ;;  %s45_s22 = int_to_ptr.vmem [resolvable:$true] %s44_s22 }
  0x26   :  { %s542_s25 = scalar_lea.hbm %s783_s0, 128 }
  0x27   :  { %p543_p2 = scmp.ne.s32.totalorder %s783_s0, %s542_s25  ;;  %p546_p3 = scmp.lt.u32.totalorder %s542_s25, %s783_s0 }
  0x29   :  { %p548_p4 = pnand %p546_p3, %p543_p2 }
  0x2b   :  { %551 = shalt.err (!%p548_p4)
}
  0x2c   :  { %s552_s3 = scalar_lea.vmem %s20_s19, 128  ;;  %p557_p6 = scmp.lt.s32.totalorder %s20_s19, %s20_s19 }
  0x2d   :  { %p553_p5 = scmp.ne.s32.totalorder %s20_s19, %s552_s3  ;;  %p558_p7 = scmp.lt.s32.totalorder %s552_s3, %s552_s3 }
  0x2f   :  { %p559_p8 = por %p558_p7, %p557_p6 }
  0x31   :  { %p560_p9 = pnand %p559_p8, %p553_p5 }
  0x33   :  { %563 = shalt.err (!%p560_p9)
}
  0x34   :  { %25 = dma.hbm_to_vmem [thread:$0]  %s783_s0, 128, %s20_s19, [#allocation4], %s640_s30, %s640_s30, %s641_s6  }
  0x35   :  { %s564_s10 = scalar_lea.hbm %s785_s2, 16 }
  0x36   :  { %p565_p10 = scmp.ne.s32.totalorder %s785_s2, %s564_s10  ;;  %p568_p11 = scmp.lt.u32.totalorder %s564_s10, %s785_s2 }
  0x38   :  { %p570_p12 = pnand %p568_p11, %p565_p10 }
  0x3a   :  { %573 = shalt.err (!%p570_p12)
}
  0x3b   :  { %s574_s15 = scalar_lea.vmem %s45_s22, 16  ;;  %s578_s16 = scalar_lea.vmem %s45_s22, 32 }
  0x3c   :  { %p575_p13 = scmp.ne.s32.totalorder %s45_s22, %s574_s15  ;;  %p579_p0 = scmp.lt.s32.totalorder %s45_s22, %s45_s22 }
  0x3d   :  { %p580_p1 = scmp.lt.s32.totalorder %s578_s16, %s574_s15 }
  0x3f   :  { %p581_p2 = por %p580_p1, %p579_p0 }
  0x41   :  { %p582_p3 = pnand %p581_p2, %p575_p13 }
  0x43   :  { %585 = shalt.err (!%p582_p3)
}
  0x44   :  { %47 = dma.hbm_to_vmem [thread:$0]  %s785_s2, 16, %s45_s22, [#allocation7]  }
  0x45   :  { %s644_s6 = smov [#allocation11]   ;;  %s586_s19 = scalar_lea.hbm %s787_s4, 16 }
  0x46   :  { %s66_s1 = sshll.u32 %s644_s6, 4  ;;  %p587_p4 = scmp.ne.s32.totalorder %s787_s4, %s586_s19  ;;  %s67_s1 = int_to_ptr.vmem [resolvable:$true] %s66_s1 }
  0x47   :  { %p590_p5 = scmp.lt.u32.totalorder %s586_s19, %s787_s4 }
  0x49   :  { %p592_p6 = pnand %p590_p5, %p587_p4 }
  0x4b   :  { %595 = shalt.err (!%p592_p6)
}
  0x4c   :  { %s596_s26 = scalar_lea.vmem %s67_s1, 16  ;;  %s600_s2 = scalar_lea.vmem %s67_s1, 32 }
  0x4d   :  { %p597_p7 = scmp.ne.s32.totalorder %s67_s1, %s596_s26  ;;  %p601_p8 = scmp.lt.s32.totalorder %s67_s1, %s67_s1 }
  0x4e   :  { %p602_p9 = scmp.lt.s32.totalorder %s600_s2, %s596_s26 }
  0x50   :  { %p603_p10 = por %p602_p9, %p601_p8 }
  0x52   :  { %p604_p11 = pnand %p603_p10, %p597_p7 }
  0x54   :  { %607 = shalt.err (!%p604_p11)
}
  0x55   :  { %69 = dma.hbm_to_vmem [thread:$0]  %s787_s4, 16, %s67_s1, [#allocation10]  }
  0x56   :  { %630 = dma.done.wait [#allocation4], 128  }
  0x57   :  { %631 = vsyncadd [#allocation4], 4294967168 }
  0x58   :  { %632 = dma.done.wait [#allocation7], 1040  }
  0x59   :  { %633 = vsyncadd [#allocation7], 4294966256 }
  0x5a   :  { %634 = dma.done.wait [#allocation10], 1040  }
  0x5b   :  { %635 = vsyncadd [#allocation10], 4294966256  ;;  %v645_v0 = vmov 0.0   ;;  %vm646_vm0 = vmmov 0   ;;  %vm97_vm1 = vcmask 261120   ;;  %v477_v1 = vld [vmem:[#allocation6] sm:$0xff]  }
  0x5c   :  { %425 = vmatprep.subr.bf16.mxu0 %v645_v0  ;;  %441 = vmatprep.mubr.msk.bf16.mxu0 %vm646_vm0, %v645_v0  ;;  %v175_v2 = vsel %vm97_vm1, %v477_v1, 0  ;;  %v478_v3 = vld [vmem:[#allocation6 + $0x8] sm:$0xff]   ;;  %v479_v6 = vld [vmem:[#allocation6 + $0x10] sm:$0xff]   ;;  %v480_v9 = vld [vmem:[#allocation6 + $0x18] sm:$0xff]   ;;  %s647_s4 = smov [#allocation12]  }
  0x5d   :  { %445 = vmatprep.subr.bf16.mxu1 %v645_v0  ;;  %461 = vmatprep.mubr.msk.bf16.mxu1 %vm646_vm0, %v645_v0  ;;  %v178_v4 = vsel %vm97_vm1, %v478_v3, 0  ;;  %v486_v5 = vld [vmem:[#allocation9] sm:$0xff]   ;;  %v487_v7 = vld [vmem:[#allocation9 + $0x8] sm:$0xff]   ;;  %v181_v8 = vsel %vm97_vm1, %v479_v6, 0  ;;  %v184_v10 = vsel %vm97_vm1, %v480_v9, 0  ;;  %v484_v17 = vld [vmem:[#allocation6 + $0x38] sm:$0xff]  }
  0x5e   :  { %426 = vmatpush3.bf16.xpose.msra.mxu0 %v175_v2  ;;  %446 = vmatpush3.bf16.msra.mxu1 %v486_v5  ;;  %v481_v11 = vld [vmem:[#allocation6 + $0x20] sm:$0xff]   ;;  %v482_v13 = vld [vmem:[#allocation6 + $0x28] sm:$0xff]   ;;  %v483_v15 = vld [vmem:[#allocation6 + $0x30] sm:$0xff]   ;;  %v196_v18 = vsel %vm97_vm1, %v484_v17, 0  ;;  %s373_s28 = sshll.u32 %s647_s4, 4  ;;  %s374_s28 = int_to_ptr.vmem [resolvable:$true] %s373_s28 }
  0x5f   :  { %427 = vmatprep.subr.bf16.mxu0 %v645_v0  ;;  %447 = vmatprep.subr.bf16.mxu1 %v645_v0  ;;  %v187_v12 = vsel %vm97_vm1, %v481_v11, 0  ;;  %v190_v14 = vsel %vm97_vm1, %v482_v13, 0  ;;  %v193_v16 = vsel %vm97_vm1, %v483_v15, 0  ;;  %v485_v19 = vld [vmem:[#allocation3] sm:$0xff]   ;;  %v490_v22 = vld [vmem:[#allocation9 + $0x20] sm:$0xff]   ;;  %v491_v23 = vld [vmem:[#allocation9 + $0x28] sm:$0xff]   ;;  %p613_p13 = scmp.lt.s32.totalorder %s374_s28, %s374_s28 }
  0x60   :  { %v488_v20 = vld [vmem:[#allocation9 + $0x10] sm:$0xff]   ;;  %v489_v21 = vld [vmem:[#allocation9 + $0x18] sm:$0xff]   ;;  %v387_v26 = vld [vmem:[#allocation11] ss:$0 sm:$0xff]  ;;  %s608_s29 = scalar_lea.vmem %s374_s28, 256 }
  0x61   :  { %v492_v24 = vld [vmem:[#allocation9 + $0x30] sm:$0xff]   ;;  %v493_v25 = vld [vmem:[#allocation9 + $0x38] sm:$0xff]   ;;  %98 = vst.msk [vmem:[#allocation2] sm:$0xff] %vm97_vm1, %v387_v26  ;;  %99 = vst.msk [vmem:[#allocation2 + $0x8] sm:$0xff] %vm97_vm1, %v387_v26  ;;  %p609_p12 = scmp.ne.s32.totalorder %s374_s28, %s608_s29  ;;  %p614_p0 = scmp.lt.s32.totalorder %s608_s29, %s608_s29 }
  0x62   :  { %448 = vmatpush3.bf16.msra.mxu1 %v487_v7  ;;  %v388_v27 = vld [vmem:[#allocation8] ss:$0 sm:$0xff] }
  0x63   :  { %449 = vmatprep.subr.bf16.mxu1 %v645_v0  ;;  %p615_p1 = por %p614_p0, %p613_p13 }
  0x65   :  { %p616_p2 = pnand %p615_p1, %p609_p12 }
  0x66   :  { %428 = vmatpush3.bf16.xpose.msra.mxu0 %v178_v4  ;;  %450 = vmatpush3.bf16.msra.mxu1 %v488_v20 }
  0x67   :  { %429 = vmatprep.subr.bf16.mxu0 %v645_v0  ;;  %451 = vmatprep.subr.bf16.mxu1 %v645_v0 }
  0x68   :  { %v249_v45 = vld [vmem:[#allocation2] sm:$0xff]  ;;  %v250_v47 = vld [vmem:[#allocation2 + $0x8] sm:$0xff] }
  0x6a   :  { %452 = vmatpush3.bf16.msra.mxu1 %v489_v21 }
  0x6b   :  { %453 = vmatprep.subr.bf16.mxu1 %v645_v0 }
  0x6e   :  { %430 = vmatpush3.bf16.xpose.msra.mxu0 %v181_v8  ;;  %454 = vmatpush3.bf16.msra.mxu1 %v490_v22 }
  0x6f   :  { %431 = vmatprep.subr.bf16.mxu0 %v645_v0  ;;  %455 = vmatprep.subr.bf16.mxu1 %v645_v0 }
  0x72   :  { %456 = vmatpush3.bf16.msra.mxu1 %v491_v23 }
  0x73   :  { %457 = vmatprep.subr.bf16.mxu1 %v645_v0 }
  0x76   :  { %432 = vmatpush3.bf16.xpose.msra.mxu0 %v184_v10  ;;  %458 = vmatpush3.bf16.msra.mxu1 %v492_v24 }
  0x77   :  { %433 = vmatprep.subr.bf16.mxu0 %v645_v0  ;;  %459 = vmatprep.subr.bf16.mxu1 %v645_v0 }
  0x7a   :  { %460 = vmatpush3.bf16.msra.mxu1 %v493_v25 }
  0x7e   :  { %434 = vmatpush3.bf16.xpose.msra.mxu0 %v187_v12 }
  0x7f   :  { %435 = vmatprep.subr.bf16.mxu0 %v645_v0 }
  0x86   :  { %436 = vmatpush3.bf16.xpose.msra.mxu0 %v190_v14 }
  0x87   :  { %437 = vmatprep.subr.bf16.mxu0 %v645_v0 }
  0x8e   :  { %438 = vmatpush3.bf16.xpose.msra.mxu0 %v193_v16 }
  0x8f   :  { %439 = vmatprep.subr.bf16.mxu0 %v645_v0 }
  0x96   :  { %440 = vmatpush3.bf16.xpose.msra.mxu0 %v196_v18 }
  0x9d   :  { %442 = vmatmul.mubr.msk.bf16.vlgmr.msra.gmra.mrb[0].mxu0 %vm97_vm1, %v485_v19 }
 0x170   :  { %v232_v28 = vpop.f32.mrb[0].mxu0 }
 0x171   :  { %v233_v29 = vadd.f32 %v388_v27, %v232_v28  ;;  %v443_v30 = vpop.f32.mrb[1].mxu0 }
 0x172   :  { %v235_v31 = vpop.f32.mrb[2].mxu0 }
 0x173   :  { %v241_v32 = vmul.f32 0.70710677, %v233_v29  ;;  %v236_v33 = vadd.f32 %v388_v27, %v235_v31  ;;  %v444_v34 = vpop.f32.mrb[3].mxu0  ;;  %v239_v39 = vmul.f32 0.5, %v233_v29 }
 0x175   :  { %494 = verf.f32 %v241_v32  ;;  %v242_v35 = vmul.f32 0.70710677, %v236_v33  ;;  %v240_v40 = vmul.f32 0.5, %v236_v33 }
 0x177   :  { %496 = verf.f32 %v242_v35 }
 0x17f   :  { %v495_v36 = vpop.eup %494 }
 0x180   :  { %v245_v37 = vadd.f32 1.0, %v495_v36 }
 0x181   :  { %v497_v38 = vpop.eup %496 }
 0x182   :  { %v246_v41 = vadd.f32 1.0, %v497_v38  ;;  %v247_v42 = vmul.f32 %v245_v37, %v239_v39 }
 0x184   :  { %v248_v43 = vmul.f32 %v246_v41, %v240_v40 }
 0x186   :  { %v251_v44 = vpack.c.bf16 %v248_v43, %v247_v42 }
 0x188   :  { %462 = vmatmul.mubr.bf16.vlgmr.msra.gmra.mrb[0].mxu1 %v251_v44 }
 0x25b   :  { %v350_v46 = vpop.f32.mrb[0].mxu1 }
 0x25c   :  { %v357_v48 = vadd.f32 %v350_v46, %v249_v45  ;;  %v463_v49 = vpop.f32.mrb[1].mxu1 }
 0x25d   :  { %v353_v50 = vpop.f32.mrb[2].mxu1 }
 0x25e   :  { %359 = vst.msk [vmem:[#allocation2] sm:$0xff] %vm97_vm1, %v357_v48  ;;  %v358_v51 = vadd.f32 %v353_v50, %v250_v47  ;;  %v464_v52 = vpop.f32.mrb[3].mxu1 }
 0x260   :  { %360 = vst.msk [vmem:[#allocation2 + $0x8] sm:$0xff] %vm97_vm1, %v358_v51 }
 0x265   :  { %v364_v53 = vld [vmem:[#allocation2] sm:$0xff] }
 0x266   :  { %366 = vst.msk [vmem:[#allocation12] sm:$0xff] %vm97_vm1, %v364_v53 }
 0x267   :  { %v365_v54 = vld [vmem:[#allocation2 + $0x8] sm:$0xff] }
 0x268   :  { %367 = vst.msk [vmem:[#allocation12 + $0x8] sm:$0xff] %vm97_vm1, %v365_v54 }
 0x269   :  { %619 = shalt.err (!%p616_p2)
}
 0x26a   :  { %s620_s7 = scalar_lea.hbm %s788_s5, 256 }
 0x26b   :  { %p621_p3 = scmp.ne.s32.totalorder %s788_s5, %s620_s7  ;;  %p624_p4 = scmp.lt.u32.totalorder %s620_s7, %s788_s5 }
 0x26d   :  { %p626_p5 = pnand %p624_p4, %p621_p3 }
 0x26f   :  { %629 = shalt.err (!%p626_p5)
}
 0x270   :  { %s648_s12 = smov 128   ;;  %s649_s13 = smov 8  }
 0x271   :  { %379 = dma.vmem_to_hbm [thread:$0]  %s374_s28, 256, %s788_s5, [#allocation5], %s648_s12, %s648_s12, %s649_s13  }
 0x272   :  { %636 = dma.done.wait [#allocation5], 256  }
 0x273   :  { %637 = vsyncadd [#allocation5], 4294967040 }
 0x274   :  { %383 = vsyncpa [#allocation4], 1 }
 0x275   :  { %384 = vsyncpa [#allocation7], 1 }
 0x276   :  { %385 = vsyncpa [#allocation10], 1 }
 0x277   :  { %386 = vsyncpa [#allocation5], 1 }

</bundles_post_ra>
